<compile_context>
chip_gen: v7x
topology: tpu7x:2x2x1
jax: 0.10.0
libtpu: 0.0.40
codegen_flags: <defaults>
</compile_context>

<pallas_src>
import jax
import jax.numpy as jnp
from jax.experimental import pallas as pl
from jax.experimental.pallas import tpu as pltpu

MARGIN = 2.0
EPS = 1e-6          # F.pairwise_distance default eps (added to every element)
LANE = 128
SUBLANE = 8
_MIB = 1024 * 1024


def _round_up(x, m):
    return (x + m - 1) // m * m


def _cdiv(a, b):
    return -(-a // b)


def _vmem_capacity_bytes():
    try:
        info = pltpu.get_tpu_info()
        cap = getattr(info, "vmem_capacity_bytes", None)
        if cap:
            return int(cap)
    except Exception:
        pass
    return None


def _make_dist_sq_kernel(chunk):
    """Accumulates per-row lane partials of sum((x0 - x1 + EPS)^2) over D."""

    def kernel(x0_ref, x1_ref, acc_ref):
        # x0_ref / x1_ref : (tb, td) in the input's native dtype.
        # acc_ref         : (tb, LANE) f32 output block, resident in VMEM across
        #                   the trailing ("arbitrary") reduction axis.
        k = pl.program_id(2)

        @pl.when(k == 0)
        def _init():
            acc_ref[...] = jnp.zeros_like(acc_ref)

        td = x0_ref.shape[1]
        # Chunked, fused slice -> upcast -> diff -> square -> accumulate.
        # Static lane-aligned slices keep the working set in vregs (no full
        # (tb, td) f32 intermediates in VMEM); accumulating through acc_ref
        # bounds live ranges across the statically unrolled loop.  All of this
        # is hidden under the HBM DMA of the next tile.
        for j in range(td // chunk):
            lo = j * chunk
            a = x0_ref[:, lo:lo + chunk].astype(jnp.float32)
            b = x1_ref[:, lo:lo + chunk].astype(jnp.float32)
            diff = a - b + EPS
            sq = diff * diff
            part = sq[:, :LANE]
            for jj in range(1, chunk // LANE):
                part = part + sq[:, jj * LANE:(jj + 1) * LANE]
            acc_ref[...] += part

    return kernel


def contrastive_loss(out_vec_t0, out_vec_t1, label, *, max_tile_bytes=None):
    """loss = mean(label * d^2 + (1-label) * max(margin - d, 0)^2), d = ||x0-x1+eps||_2."""
    b = out_vec_t0.shape[0]
    x0 = out_vec_t0.reshape(b, -1)      # native dtype; upcast per chunk in-kernel
    x1 = out_vec_t1.reshape(b, -1)
    d = x0.shape[1]
    itemsize = jnp.dtype(x0.dtype).itemsize

    # ---- batch tiling: never pad / copy along the batch axis ----------------
    if b % SUBLANE == 0 and b > 64:
        tb = 64                          # divisible by 8; last block may be partial
        nb = _cdiv(b, tb)                # OOB rows are discarded at writeback
    else:
        tb = b                           # block dim == full array dim: always legal
        nb = 1

    # ---- generation-aware VMEM budget ---------------------------------------
    cap = _vmem_capacity_bytes()
    if cap is not None and cap <= 64 * _MIB:           # v7x-class core (64 MiB VMEM)
        target_buf, limit_cap = 4 * _MIB, 48 * _MIB
    elif cap is not None:                              # v5e / v6e (128 MiB VMEM)
        target_buf, limit_cap = 6 * _MIB, 64 * _MIB
    else:                                              # unknown: stay conservative
        target_buf, limit_cap = 4 * _MIB, 40 * _MIB
    if max_tile_bytes is not None:
        target_buf = min(target_buf, max_tile_bytes)

    # ---- D tiling: td divides round_up(d, 128); pad at most 127 columns -----
    d_pad = _round_up(d, LANE)
    n128 = d_pad // LANE
    max_blocks = max(1, (target_buf // max(1, tb * itemsize)) // LANE)
    blocks = 1
    for m in range(min(n128, max_blocks), 0, -1):
        if n128 % m == 0:
            blocks = m
            break
    td = blocks * LANE
    nd = n128 // blocks

    if d_pad != d:
        # x0 <- 0 and x1 <- EPS so padded columns give (0 - EPS + EPS)^2 == 0.
        x0 = jnp.pad(x0, ((0, 0), (0, d_pad - d)))
        x1 = jnp.pad(x1, ((0, 0), (0, d_pad - d)), constant_values=EPS)

    # ---- optional split of the reduction so both v7x TensorCores get work ---
    n_split = 2 if (nb == 1 and nd >= 2 and nd % 2 == 0) else 1
    nd_per = nd // n_split

    chunk = 256 if td % 256 == 0 else LANE

    grid = (n_split, nb, nd_per)
    x_imap = lambda c, i, k: (i, c * nd_per + k)

    tile_bytes = tb * td * itemsize
    vmem_limit = int(min(limit_cap,
                         max(32 * _MIB,
                             2 * 3 * tile_bytes + 4 * tb * LANE * 4 + 2 * _MIB)))

    cost = pl.CostEstimate(
        flops=4 * b * d_pad,
        transcendentals=0,
        bytes_accessed=2 * b * d_pad * itemsize + n_split * b * LANE * 4,
    )

    def _call(in_specs):
        return pl.pallas_call(
            _make_dist_sq_kernel(chunk),
            out_shape=jax.ShapeDtypeStruct((n_split, b, LANE), jnp.float32),
            grid=grid,
            in_specs=in_specs,
            out_specs=pl.BlockSpec((None, tb, LANE), lambda c, i, k: (c, i, 0)),
            compiler_params=pltpu.CompilerParams(
                dimension_semantics=("parallel", "parallel", "arbitrary"),
                vmem_limit_bytes=vmem_limit,
            ),
            cost_estimate=cost,
        )(x0, x1)

    partials = None
    if n_split * nb * nd_per >= 3 and hasattr(pl, "Buffered"):
        # DMA-bound pipeline: a 3rd in-flight buffer per input can lift achieved
        # HBM bandwidth a few percent; fall back cleanly if unsupported.
        try:
            buffered = [
                pl.BlockSpec((tb, td), x_imap, pipeline_mode=pl.Buffered(3)),
                pl.BlockSpec((tb, td), x_imap, pipeline_mode=pl.Buffered(3)),
            ]
            partials = _call(buffered)
        except Exception:
            partials = None
    if partials is None:
        partials = _call([pl.BlockSpec((tb, td), x_imap),
                          pl.BlockSpec((tb, td), x_imap)])

    # ---- finalize on KB-scale data in the wrapper ----------------------------
    dist_sq = jnp.sum(partials, axis=(0, 2))                  # (b,)
    dist = jnp.sqrt(dist_sq)
    lab = label.reshape(-1).astype(jnp.float32)
    hinge = jnp.maximum(MARGIN - dist, 0.0)
    loss = lab * dist_sq + (1.0 - lab) * hinge * hinge
    return jnp.mean(loss)


def _reference(out_vec_t0, out_vec_t1, label):
    b = out_vec_t0.shape[0]
    x0 = out_vec_t0.reshape(b, -1).astype(jnp.float32)
    x1 = out_vec_t1.reshape(b, -1).astype(jnp.float32)
    dist = jnp.sqrt(jnp.sum((x0 - x1 + EPS) ** 2, axis=-1))
    lab = label.reshape(-1).astype(jnp.float32)
    loss = lab * dist ** 2 + (1.0 - lab) * jnp.maximum(MARGIN - dist, 0.0) ** 2
    return jnp.mean(loss)


if __name__ == "__main__":
    key = jax.random.PRNGKey(0)

    # Primary case: (B, C, H, W) = (2, 4, 16, 16) feature maps, f32.
    k0, k1, k2 = jax.random.split(key, 3)
    B, C, H, W = 2, 4, 16, 16
    x0 = jax.random.normal(k0, (B, C, H, W), dtype=jnp.float32) * 0.1
    x1 = jax.random.normal(k1, (B, C, H, W), dtype=jnp.float32) * 0.1
    label = jax.random.bernoulli(k2, 0.5, (B,)).astype(jnp.float32)

    loss = contrastive_loss(x0, x1, label)
    jax.block_until_ready(loss)
    ref = _reference(x0, x1, label)
    assert jnp.allclose(loss, ref, rtol=1e-5, atol=1e-5), (loss, ref)

    # Extra coverage: bf16 inputs, D not a multiple of 128 (<=127-col pad),
    # multi-step reduction and the dual-TensorCore D-split (forced small tiles).
    k3, k4, k5 = jax.random.split(k2, 3)
    y0 = (jax.random.normal(k3, (12, 1000), dtype=jnp.float32) * 0.05).astype(jnp.bfloat16)
    y1 = (jax.random.normal(k4, (12, 1000), dtype=jnp.float32) * 0.05).astype(jnp.bfloat16)
    ylab = jax.random.bernoulli(k5, 0.5, (12,)).astype(jnp.float32)
    loss2 = contrastive_loss(y0, y1, ylab, max_tile_bytes=12 * 256 * 2)
    jax.block_until_ready(loss2)
    ref2 = _reference(y0, y1, ylab)
    assert jnp.allclose(loss2, ref2, rtol=1e-4, atol=1e-4), (loss2, ref2)

    # Extra coverage: batch tiling with a partial last batch block (no padding).
    k6, k7, k8 = jax.random.split(k5, 3)
    z0 = jax.random.normal(k6, (72, 1024), dtype=jnp.float32) * 0.05
    z1 = jax.random.normal(k7, (72, 1024), dtype=jnp.float32) * 0.05
    zlab = jax.random.bernoulli(k8, 0.5, (72,)).astype(jnp.float32)
    loss3 = contrastive_loss(z0, z1, zlab, max_tile_bytes=64 * 256 * 4)
    jax.block_until_ready(loss3)
    ref3 = _reference(z0, z1, zlab)
    assert jnp.allclose(loss3, ref3, rtol=1e-5, atol=1e-5), (loss3, ref3)

    print("KERNEL_OK")
</pallas_src>

<mosaic_0001>
module attributes {stable_mosaic.version = 11 : i64} {
  func.func @kernel(%arg0: i32, %arg1: i32, %arg2: i32, %arg3: memref<2x1024xf32, #tpu.memory_space<vmem>>, %arg4: memref<2x1024xf32, #tpu.memory_space<vmem>>, %arg5: memref<1x2x128xf32, #tpu.memory_space<vmem>>) attributes {dimension_semantics = [#tpu.dimension_semantics<parallel>, #tpu.dimension_semantics<parallel>, #tpu.dimension_semantics<arbitrary>], iteration_bounds = array<i64: 1, 1, 1>, scalar_prefetch = 0 : i64, scratch_operands = 0 : i64, tpu.core_type = #tpu.core_type<tc>, window_params = [{transform_indices = @transform_0, window_bounds = array<i64: 2, 1024>}, {transform_indices = @transform_1, window_bounds = array<i64: 2, 1024>}, {transform_indices = @transform_2, window_bounds = array<i64: 1, 2, 128>}]} {
    %c0_i32 = arith.constant 0 : i32
    %0 = arith.cmpi eq, %arg2, %c0_i32 : i32
    %1 = arith.extui %0 : i1 to i32
    %c0_i32_0 = arith.constant 0 : i32
    %2 = arith.cmpi ne, %1, %c0_i32_0 : i32
    scf.if %2 {
      %cst_40 = arith.constant 0.000000e+00 : f32
      %63 = vector.broadcast %cst_40 : f32 to vector<2x128xf32>
      %c0_41 = arith.constant 0 : index
      %c0_42 = arith.constant 0 : index
      %c0_43 = arith.constant 0 : index
      %64 = vector.load %arg5[%c0_41, %c0_42, %c0_43] : memref<1x2x128xf32, #tpu.memory_space<vmem>>, vector<1x2x128xf32>
      %65 = vector.shape_cast %64 : vector<1x2x128xf32> to vector<2x128xf32>
      %66 = vector.shape_cast %63 : vector<2x128xf32> to vector<1x2x128xf32>
      tpu.vector_store %arg5[%c0_41, %c0_42, %c0_43], %66 {strides = array<i32>} : memref<1x2x128xf32, #tpu.memory_space<vmem>>, vector<1x2x128xf32>,
    } else {
    }
    %c0 = arith.constant 0 : index
    %c0_1 = arith.constant 0 : index
    %3 = vector.load %arg3[%c0, %c0_1] : memref<2x1024xf32, #tpu.memory_space<vmem>>, vector<2x256xf32>
    %c0_2 = arith.constant 0 : index
    %c0_3 = arith.constant 0 : index
    %4 = vector.load %arg4[%c0_2, %c0_3] : memref<2x1024xf32, #tpu.memory_space<vmem>>, vector<2x256xf32>
    %5 = arith.subf %3, %4 : vector<2x256xf32>
    %cst = arith.constant 9.99999997E-7 : f32
    %6 = vector.broadcast %cst : f32 to vector<2x256xf32>
    %7 = arith.addf %5, %6 : vector<2x256xf32>
    %8 = arith.mulf %7, %7 : vector<2x256xf32>
    %9 = vector.extract_strided_slice %8 {offsets = [0, 0], sizes = [2, 128], strides = [1, 1]} : vector<2x256xf32> to vector<2x128xf32>
    %10 = vector.extract_strided_slice %8 {offsets = [0, 128], sizes = [2, 128], strides = [1, 1]} : vector<2x256xf32> to vector<2x128xf32>
    %11 = arith.addf %9, %10 : vector<2x128xf32>
    %c0_4 = arith.constant 0 : index
    %c0_5 = arith.constant 0 : index
    %c0_6 = arith.constant 0 : index
    %12 = vector.load %arg5[%c0_4, %c0_5, %c0_6] : memref<1x2x128xf32, #tpu.memory_space<vmem>>, vector<1x2x128xf32>
    %13 = vector.shape_cast %12 : vector<1x2x128xf32> to vector<2x128xf32>
    %14 = arith.addf %13, %11 : vector<2x128xf32>
    %c0_7 = arith.constant 0 : index
    %c0_8 = arith.constant 0 : index
    %c0_9 = arith.constant 0 : index
    %15 = vector.load %arg5[%c0_7, %c0_8, %c0_9] : memref<1x2x128xf32, #tpu.memory_space<vmem>>, vector<1x2x128xf32>
    %16 = vector.shape_cast %15 : vector<1x2x128xf32> to vector<2x128xf32>
    %17 = vector.shape_cast %14 : vector<2x128xf32> to vector<1x2x128xf32>
    tpu.vector_store %arg5[%c0_7, %c0_8, %c0_9], %17 {strides = array<i32>} : memref<1x2x128xf32, #tpu.memory_space<vmem>>, vector<1x2x128xf32>,
    %c0_10 = arith.constant 0 : index
    %c256 = arith.constant 256 : index
    %18 = vector.load %arg3[%c0_10, %c256] : memref<2x1024xf32, #tpu.memory_space<vmem>>, vector<2x256xf32>
    %c0_11 = arith.constant 0 : index
    %c256_12 = arith.constant 256 : index
    %19 = vector.load %arg4[%c0_11, %c256_12] : memref<2x1024xf32, #tpu.memory_space<vmem>>, vector<2x256xf32>
    %20 = arith.subf %18, %19 : vector<2x256xf32>
    %cst_13 = arith.constant 9.99999997E-7 : f32
    %21 = vector.broadcast %cst_13 : f32 to vector<2x256xf32>
    %22 = arith.addf %20, %21 : vector<2x256xf32>
    %23 = arith.mulf %22, %22 : vector<2x256xf32>
    %24 = vector.extract_strided_slice %23 {offsets = [0, 0], sizes = [2, 128], strides = [1, 1]} : vector<2x256xf32> to vector<2x128xf32>
    %25 = vector.extract_strided_slice %23 {offsets = [0, 128], sizes = [2, 128], strides = [1, 1]} : vector<2x256xf32> to vector<2x128xf32>
    %26 = arith.addf %24, %25 : vector<2x128xf32>
    %c0_14 = arith.constant 0 : index
    %c0_15 = arith.constant 0 : index
    %c0_16 = arith.constant 0 : index
    %27 = vector.load %arg5[%c0_14, %c0_15, %c0_16] : memref<1x2x128xf32, #tpu.memory_space<vmem>>, vector<1x2x128xf32>
    %28 = vector.shape_cast %27 : vector<1x2x128xf32> to vector<2x128xf32>
    %29 = arith.addf %28, %26 : vector<2x128xf32>
    %c0_17 = arith.constant 0 : index
    %c0_18 = arith.constant 0 : index
    %c0_19 = arith.constant 0 : index
    %30 = vector.load %arg5[%c0_17, %c0_18, %c0_19] : memref<1x2x128xf32, #tpu.memory_space<vmem>>, vector<1x2x128xf32>
    %31 = vector.shape_cast %30 : vector<1x2x128xf32> to vector<2x128xf32>
    %32 = vector.shape_cast %29 : vector<2x128xf32> to vector<1x2x128xf32>
    tpu.vector_store %arg5[%c0_17, %c0_18, %c0_19], %32 {strides = array<i32>} : memref<1x2x128xf32, #tpu.memory_space<vmem>>, vector<1x2x128xf32>,
    %c0_20 = arith.constant 0 : index
    %c512 = arith.constant 512 : index
    %33 = vector.load %arg3[%c0_20, %c512] : memref<2x1024xf32, #tpu.memory_space<vmem>>, vector<2x256xf32>
    %c0_21 = arith.constant 0 : index
    %c512_22 = arith.constant 512 : index
    %34 = vector.load %arg4[%c0_21, %c512_22] : memref<2x1024xf32, #tpu.memory_space<vmem>>, vector<2x256xf32>
    %35 = arith.subf %33, %34 : vector<2x256xf32>
    %cst_23 = arith.constant 9.99999997E-7 : f32
    %36 = vector.broadcast %cst_23 : f32 to vector<2x256xf32>
    %37 = arith.addf %35, %36 : vector<2x256xf32>
    %38 = arith.mulf %37, %37 : vector<2x256xf32>
    %39 = vector.extract_strided_slice %38 {offsets = [0, 0], sizes = [2, 128], strides = [1, 1]} : vector<2x256xf32> to vector<2x128xf32>
    %40 = vector.extract_strided_slice %38 {offsets = [0, 128], sizes = [2, 128], strides = [1, 1]} : vector<2x256xf32> to vector<2x128xf32>
    %41 = arith.addf %39, %40 : vector<2x128xf32>
    %c0_24 = arith.constant 0 : index
    %c0_25 = arith.constant 0 : index
    %c0_26 = arith.constant 0 : index
    %42 = vector.load %arg5[%c0_24, %c0_25, %c0_26] : memref<1x2x128xf32, #tpu.memory_space<vmem>>, vector<1x2x128xf32>
    %43 = vector.shape_cast %42 : vector<1x2x128xf32> to vector<2x128xf32>
    %44 = arith.addf %43, %41 : vector<2x128xf32>
    %c0_27 = arith.constant 0 : index
    %c0_28 = arith.constant 0 : index
    %c0_29 = arith.constant 0 : index
    %45 = vector.load %arg5[%c0_27, %c0_28, %c0_29] : memref<1x2x128xf32, #tpu.memory_space<vmem>>, vector<1x2x128xf32>
    %46 = vector.shape_cast %45 : vector<1x2x128xf32> to vector<2x128xf32>
    %47 = vector.shape_cast %44 : vector<2x128xf32> to vector<1x2x128xf32>
    tpu.vector_store %arg5[%c0_27, %c0_28, %c0_29], %47 {strides = array<i32>} : memref<1x2x128xf32, #tpu.memory_space<vmem>>, vector<1x2x128xf32>,
    %c0_30 = arith.constant 0 : index
    %c768 = arith.constant 768 : index
    %48 = vector.load %arg3[%c0_30, %c768] : memref<2x1024xf32, #tpu.memory_space<vmem>>, vector<2x256xf32>
    %c0_31 = arith.constant 0 : index
    %c768_32 = arith.constant 768 : index
    %49 = vector.load %arg4[%c0_31, %c768_32] : memref<2x1024xf32, #tpu.memory_space<vmem>>, vector<2x256xf32>
    %50 = arith.subf %48, %49 : vector<2x256xf32>
    %cst_33 = arith.constant 9.99999997E-7 : f32
    %51 = vector.broadcast %cst_33 : f32 to vector<2x256xf32>
    %52 = arith.addf %50, %51 : vector<2x256xf32>
    %53 = arith.mulf %52, %52 : vector<2x256xf32>
    %54 = vector.extract_strided_slice %53 {offsets = [0, 0], sizes = [2, 128], strides = [1, 1]} : vector<2x256xf32> to vector<2x128xf32>
    %55 = vector.extract_strided_slice %53 {offsets = [0, 128], sizes = [2, 128], strides = [1, 1]} : vector<2x256xf32> to vector<2x128xf32>
    %56 = arith.addf %54, %55 : vector<2x128xf32>
    %c0_34 = arith.constant 0 : index
    %c0_35 = arith.constant 0 : index
    %c0_36 = arith.constant 0 : index
    %57 = vector.load %arg5[%c0_34, %c0_35, %c0_36] : memref<1x2x128xf32, #tpu.memory_space<vmem>>, vector<1x2x128xf32>
    %58 = vector.shape_cast %57 : vector<1x2x128xf32> to vector<2x128xf32>
    %59 = arith.addf %58, %56 : vector<2x128xf32>
    %c0_37 = arith.constant 0 : index
    %c0_38 = arith.constant 0 : index
    %c0_39 = arith.constant 0 : index
    %60 = vector.load %arg5[%c0_37, %c0_38, %c0_39] : memref<1x2x128xf32, #tpu.memory_space<vmem>>, vector<1x2x128xf32>
    %61 = vector.shape_cast %60 : vector<1x2x128xf32> to vector<2x128xf32>
    %62 = vector.shape_cast %59 : vector<2x128xf32> to vector<1x2x128xf32>
    tpu.vector_store %arg5[%c0_37, %c0_38, %c0_39], %62 {strides = array<i32>} : memref<1x2x128xf32, #tpu.memory_space<vmem>>, vector<1x2x128xf32>,
    return
  }
  func.func @transform_0(%arg0: i32, %arg1: i32, %arg2: i32) -> (i32, i32) {
    %c1_i32 = arith.constant 1 : i32
    %0 = arith.muli %arg0, %c1_i32 : i32
    %1 = arith.addi %0, %arg2 : i32
    %c0_i32 = arith.constant 0 : i32
    return %arg1, %1 : i32, i32
  }
  func.func @transform_1(%arg0: i32, %arg1: i32, %arg2: i32) -> (i32, i32) {
    %c1_i32 = arith.constant 1 : i32
    %0 = arith.muli %arg0, %c1_i32 : i32
    %1 = arith.addi %0, %arg2 : i32
    %c0_i32 = arith.constant 0 : i32
    return %arg1, %1 : i32, i32
  }
  func.func @transform_2(%arg0: i32, %arg1: i32, %arg2: i32) -> (i32, i32, i32) {
    %c0_i32 = arith.constant 0 : i32
    %c0_i32_0 = arith.constant 0 : i32
    return %arg0, %arg1, %c0_i32 : i32, i32, i32
  }
}

</mosaic_0001>

<bundles_post_ra>
// kernel: tpu_custom_call.1
= control target key start
LH: loop header
LB: loop body
LE: loop exit
PB: predicated region body
PF: predicated region fallthrough
CT: control target
= control target key end

     0   :  { %7 = vsyncpa [#allocation3], 0  ;;  %s248_s0 = inlined_call_operand.hbm [shape: f32[2,1024], index: 0, kind: input, shape index: {}]   ;;  %s249_s1 = inlined_call_operand.hbm [shape: f32[2,1024], index: 1, kind: input, shape index: {}]   ;;  %s250_s2 = inlined_call_operand.hbm [shape: f32[1,2,128], index: 2, kind: output, shape index: {}]  }
   0x1   :  { %8 = vsyncpa [#allocation6], 0 }
   0x2   :  { %9 = vsyncpa [#allocation4], 0  ;;  %s193_s9 = smov [#allocation2]   ;;  %s194_s11 = smov [#allocation5]  }
   0x3   :  { %s20_s10 = sshll.u32 %s193_s9, 4  ;;  %s34_s12 = sshll.u32 %s194_s11, 4  ;;  %s21_s10 = int_to_ptr.vmem [resolvable:$true] %s20_s10  ;;  %s35_s12 = int_to_ptr.vmem [resolvable:$true] %s34_s12 }
   0x4   :  { %s121_s15 = scalar_lea.hbm %s248_s0, 256 }
   0x5   :  { %p122_p0 = scmp.ne.s32.totalorder %s248_s0, %s121_s15  ;;  %p125_p1 = scmp.lt.u32.totalorder %s121_s15, %s248_s0 }
   0x7   :  { %p127_p2 = pnand %p125_p1, %p122_p0 }
   0x9   :  { %130 = shalt.err (!%p127_p2)
}
   0xa   :  { %s131_s20 = scalar_lea.vmem %s21_s10, 256  ;;  %p136_p4 = scmp.lt.s32.totalorder %s21_s10, %s21_s10 }
   0xb   :  { %p132_p3 = scmp.ne.s32.totalorder %s21_s10, %s131_s20  ;;  %p137_p5 = scmp.lt.s32.totalorder %s131_s20, %s131_s20 }
   0xd   :  { %p138_p6 = por %p137_p5, %p136_p4 }
   0xf   :  { %p139_p7 = pnand %p138_p6, %p132_p3 }
  0x11   :  { %142 = shalt.err (!%p139_p7)
}
  0x12   :  { %23 = dma.hbm_to_vmem [thread:$0]  %s248_s0, 256, %s21_s10, [#allocation3]  }
  0x13   :  { %s143_s25 = scalar_lea.hbm %s249_s1, 256 }
  0x14   :  { %p144_p8 = scmp.ne.s32.totalorder %s249_s1, %s143_s25  ;;  %p147_p9 = scmp.lt.u32.totalorder %s143_s25, %s249_s1 }
  0x16   :  { %p149_p10 = pnand %p147_p9, %p144_p8 }
  0x18   :  { %152 = shalt.err (!%p149_p10)
}
  0x19   :  { %s153_s30 = scalar_lea.vmem %s35_s12, 256  ;;  %p158_p12 = scmp.lt.s32.totalorder %s35_s12, %s35_s12 }
  0x1a   :  { %p154_p11 = scmp.ne.s32.totalorder %s35_s12, %s153_s30  ;;  %p159_p13 = scmp.lt.s32.totalorder %s153_s30, %s153_s30 }
  0x1c   :  { %p160_p0 = por %p159_p13, %p158_p12 }
  0x1e   :  { %p161_p1 = pnand %p160_p0, %p154_p11 }
  0x20   :  { %164 = shalt.err (!%p161_p1)
}
  0x21   :  { %37 = dma.hbm_to_vmem [thread:$0]  %s249_s1, 256, %s35_s12, [#allocation6]  }
  0x22   :  { %187 = dma.done.wait [#allocation3], 256  }
  0x23   :  { %188 = vsyncadd [#allocation3], 4294967040 }
  0x24   :  { %189 = dma.done.wait [#allocation6], 256  }
  0x25   :  { %190 = vsyncadd [#allocation6], 4294967040  ;;  %v195_v0 = vmov 0.0   ;;  %v53_v1 = vld [vmem:[#allocation2] sm:$0xf]  ;;  %s196_s1 = smov [#allocation7]  }
  0x26   :  { %52 = vst [vmem:[#allocation7] sm:$0x3] %v195_v0  ;;  %v54_v2 = vld [vmem:[#allocation5] sm:$0xf]  ;;  %v65_v3 = vld [vmem:[#allocation2 + $0x4] sm:$0xf] }
  0x27   :  { %v55_v4 = vsub.f32 %v53_v1, %v54_v2  ;;  %v66_v5 = vld [vmem:[#allocation5 + $0x4] sm:$0xf]  ;;  %v77_v12 = vld [vmem:[#allocation2 + $0x8] sm:$0xf]  ;;  %v78_v13 = vld [vmem:[#allocation5 + $0x8] sm:$0xf] }
  0x28   :  { %v67_v6 = vsub.f32 %v65_v3, %v66_v5  ;;  %v79_v17 = vsub.f32 %v77_v12, %v78_v13  ;;  %v89_v21 = vld [vmem:[#allocation2 + $0xc] sm:$0xf]  ;;  %v90_v22 = vld [vmem:[#allocation5 + $0xc] sm:$0xf]  ;;  %s107_s4 = sshll.u32 %s196_s1, 4  ;;  %s108_s4 = int_to_ptr.vmem [resolvable:$true] %s107_s4 }
  0x29   :  { %v56_v7 = vadd.f32 1e-06, %v55_v4  ;;  %v91_v26 = vsub.f32 %v89_v21, %v90_v22  ;;  %s165_s5 = scalar_lea.vmem %s108_s4, 32  ;;  %p170_p3 = scmp.lt.s32.totalorder %s108_s4, %s108_s4 }
  0x2a   :  { %v68_v9 = vadd.f32 1e-06, %v67_v6  ;;  %v80_v19 = vadd.f32 1e-06, %v79_v17  ;;  %p166_p2 = scmp.ne.s32.totalorder %s108_s4, %s165_s5  ;;  %p171_p4 = scmp.lt.s32.totalorder %s165_s5, %s165_s5 }
  0x2b   :  { %v57_v8 = vmul.f32 %v56_v7, %v56_v7  ;;  %v92_v28 = vadd.f32 1e-06, %v91_v26 }
  0x2c   :  { %v69_v15 = vmul.f32 %v68_v9, %v68_v9  ;;  %v81_v23 = vmul.f32 %v80_v19, %v80_v19  ;;  %p172_p5 = por %p171_p4, %p170_p3 }
  0x2d   :  { %v59_v10 = vrot.slane %v57_v8, 2  ;;  %v62_v11 = vld [vmem:[#allocation7] sm:$0x3]  ;;  %v93_v30 = vmul.f32 %v92_v28, %v92_v28 }
  0x2e   :  { %v71_v18 = vrot.slane %v69_v15, 2  ;;  %v83_v27 = vrot.slane %v81_v23, 2  ;;  %p173_p6 = pnand %p172_p5, %p166_p2 }
  0x2f   :  { %v61_v14 = vadd.f32 %v59_v10, %v57_v8  ;;  %v95_v33 = vrot.slane %v93_v30, 2 }
  0x30   :  { %v73_v20 = vadd.f32 %v71_v18, %v69_v15  ;;  %v85_v29 = vadd.f32 %v83_v27, %v81_v23 }
  0x31   :  { %v63_v16 = vadd.f32 %v62_v11, %v61_v14  ;;  %v97_v34 = vadd.f32 %v95_v33, %v93_v30 }
  0x33   :  { %64 = vst [vmem:[#allocation7] sm:$0x3] %v63_v16 }
  0x3a   :  { %v74_v24 = vld [vmem:[#allocation7] sm:$0x3] }
  0x3b   :  { %v75_v25 = vadd.f32 %v74_v24, %v73_v20 }
  0x3d   :  { %76 = vst [vmem:[#allocation7] sm:$0x3] %v75_v25 }
  0x44   :  { %v86_v31 = vld [vmem:[#allocation7] sm:$0x3] }
  0x45   :  { %v87_v32 = vadd.f32 %v86_v31, %v85_v29 }
  0x47   :  { %88 = vst [vmem:[#allocation7] sm:$0x3] %v87_v32 }
  0x4e   :  { %v98_v35 = vld [vmem:[#allocation7] sm:$0x3] }
  0x4f   :  { %v99_v36 = vadd.f32 %v98_v35, %v97_v34 }
  0x51   :  { %100 = vst [vmem:[#allocation7] sm:$0x3] %v99_v36 }
  0x52   :  { %176 = shalt.err (!%p173_p6)
}
  0x53   :  { %s177_s8 = scalar_lea.hbm %s250_s2, 32 }
  0x54   :  { %p178_p7 = scmp.ne.s32.totalorder %s250_s2, %s177_s8  ;;  %p181_p8 = scmp.lt.u32.totalorder %s177_s8, %s250_s2 }
  0x56   :  { %p183_p9 = pnand %p181_p8, %p178_p7 }
  0x58   :  { %186 = shalt.err (!%p183_p9)
}
  0x59   :  { %110 = dma.vmem_to_hbm [thread:$0]  %s108_s4, 32, %s250_s2, [#allocation4]  }
  0x5a   :  { %191 = dma.done.wait [#allocation4], 32  }
  0x5b   :  { %192 = vsyncadd [#allocation4], 4294967264 }
  0x5c   :  { %114 = vsyncpa [#allocation3], 1 }
  0x5d   :  { %115 = vsyncpa [#allocation6], 1 }
  0x5e   :  { %116 = vsyncpa [#allocation4], 1 }

</bundles_post_ra>
